<compile_context>
chip_gen: v5e
topology: v5e:2x2
jax: 0.10.0
libtpu: 0.0.40
codegen_flags: <defaults>
</compile_context>

<pallas_src>
import functools
import math

import jax
import jax.numpy as jnp
from jax.experimental import pallas as pl
from jax.experimental.pallas import tpu as pltpu


def _round_up(x, m):
    return ((x + m - 1) // m) * m


def _pick_tile(n, cap):
    """Largest multiple of 128 that divides `n` and is <= cap (n % 128 == 0)."""
    t = max(128, min(cap, n))
    t -= t % 128
    while n % t:
        t -= 128
    return t


# --------------------- pass 1: support = features @ weight --------------------

def _project_kernel(feat_ref, w_ref, sup_ref):
    sup_ref[...] = jnp.dot(
        feat_ref[...], w_ref[...], preferred_element_type=jnp.float32
    ).astype(sup_ref.dtype)


# ------------------- pass 2: out = relu(adj @ support) ------------------------

def _aggregate_kernel(adj_ref, sup_ref, o_ref, acc_ref, *, active):
    k = pl.program_id(1)

    @pl.when(k == 0)
    def _init():
        acc_ref[...] = jnp.zeros_like(acc_ref)

    acc_ref[...] += jnp.dot(adj_ref[...], sup_ref[...],
                            preferred_element_type=jnp.float32)

    @pl.when(k == pl.num_programs(1) - 1)
    def _finalize():
        out = acc_ref[...]
        if active:                       # static Python bool (bound via partial)
            out = jnp.maximum(out, 0.0)
        o_ref[...] = out.astype(o_ref.dtype)


@functools.partial(jax.jit, static_argnames=("active", "compute_dtype"))
def gcn_layer_forward(features, adj, weight, *, active=True,
                      compute_dtype="bfloat16"):
    """Pallas equivalent of GCNLayer.forward(features, adj, active).

    features: (N, F_in)  float32
    adj:      (N, N)     float32 (dense normalized adjacency)
    weight:   (F_in, F_out) float32
    Returns:  (N, F_out) float32
    """
    # `adj.clone().detach()` in the reference is a no-op.
    N, F_in = features.shape
    assert adj.shape == (N, N), "adj must be (N, N)"
    assert weight.shape[0] == F_in, "weight must be (F_in, F_out)"
    F_out = weight.shape[1]

    cdt = jnp.dtype(compute_dtype)

    Np = _round_up(N, 128)
    Fip = _round_up(F_in, 128)
    Fop = _round_up(F_out, 128)

    # Cast to compute dtype; pad only when shapes are not already 128-aligned
    # (no copy at all for aligned shapes; otherwise cast+pad fuse in XLA).
    # TODO(synk): a PrefetchScalarGridSpec ragged-tail path would avoid the
    # padded adjacency copy entirely for non-128-multiple N.
    feat_c = features.astype(cdt)
    adj_c = adj.astype(cdt)
    w_c = weight.astype(cdt)
    if (Np, Fip) != (N, F_in):
        feat_c = jnp.pad(feat_c, ((0, Np - N), (0, Fip - F_in)))
    if Np != N:
        adj_c = jnp.pad(adj_c, ((0, Np - N), (0, Np - N)))
    if (Fip, Fop) != (F_in, F_out):
        w_c = jnp.pad(w_c, ((0, Fip - F_in), (0, Fop - F_out)))

    # ---- pass 1: projection (tiny vs. the adjacency pass) --------------------
    tile_p = _pick_tile(Np, 512)
    support = pl.pallas_call(
        _project_kernel,
        out_shape=jax.ShapeDtypeStruct((Np, Fop), cdt),
        grid=(Np // tile_p,),
        in_specs=[
            pl.BlockSpec((tile_p, Fip), lambda i: (i, 0)),   # features row tile
            pl.BlockSpec((Fip, Fop), lambda i: (0, 0)),      # full weight
        ],
        out_specs=pl.BlockSpec((tile_p, Fop), lambda i: (i, 0)),
        compiler_params=pltpu.CompilerParams(
            dimension_semantics=("parallel",)),
    )(feat_c, w_c)

    # ---- pass 2: aggregation + ReLU ------------------------------------------
    # Row tile capped at Np // 2 so there are >= 2 row tiles (v7x megacore);
    # reduction tile bounded separately so the adj block stays VMEM-friendly
    # on v7x's 64 MiB/TC.
    tile_m = _pick_tile(Np, min(1024, max(128, Np // 2)))
    tile_k = _pick_tile(Np, 1024)

    itemsize = cdt.itemsize
    vmem_bytes = (2 * tile_m * tile_k * itemsize      # adj double buffer
                  + 2 * tile_k * Fop * itemsize       # support double buffer
                  + 2 * tile_m * Fop * 4              # f32 output double buffer
                  + tile_m * Fop * 4)                 # f32 accumulator
    vmem_limit = int(min(max(2 * vmem_bytes, 32 << 20), 56 << 20))

    out = pl.pallas_call(
        functools.partial(_aggregate_kernel, active=active),
        out_shape=jax.ShapeDtypeStruct((Np, Fop), jnp.float32),
        grid=(Np // tile_m, Np // tile_k),
        in_specs=[
            pl.BlockSpec((tile_m, tile_k), lambda i, k: (i, k)),   # adj[i, k]
            pl.BlockSpec((tile_k, Fop), lambda i, k: (k, 0)),      # support[k]
        ],
        out_specs=pl.BlockSpec((tile_m, Fop), lambda i, k: (i, 0)),
        scratch_shapes=[pltpu.VMEM((tile_m, Fop), jnp.float32)],
        compiler_params=pltpu.CompilerParams(
            dimension_semantics=("parallel", "arbitrary"),
            vmem_limit_bytes=vmem_limit),
    )(adj_c, support)

    if (Np, Fop) != (N, F_out):
        out = out[:N, :F_out]
    return out


# ----------------------------------- main -------------------------------------

if __name__ == "__main__":
    N, F_in, F_out = 256, 128, 128          # small, 128-aligned demo shapes

    key = jax.random.PRNGKey(0)
    k_feat, k_adj, k_w = jax.random.split(key, 3)

    # Node features.
    features = jax.random.normal(k_feat, (N, F_in), jnp.float32)

    # Symmetric, self-looped, symmetrically-normalized adjacency (typical GCN
    # input); torch.spmm's sparse tensor is represented densely here.
    raw = (jax.random.uniform(k_adj, (N, N)) < 0.05).astype(jnp.float32)
    raw = jnp.maximum(raw, raw.T) + jnp.eye(N, dtype=jnp.float32)
    deg = jnp.power(jnp.maximum(raw.sum(axis=1), 1e-12), -0.5)
    adj = raw * deg[:, None] * deg[None, :]

    # Xavier-uniform weight init (matches torch.nn.init.xavier_uniform_).
    limit = math.sqrt(6.0 / (F_in + F_out))
    weight = jax.random.uniform(k_w, (F_in, F_out), jnp.float32,
                                minval=-limit, maxval=limit)

    # Plain-XLA reference (highest-precision f32 matmuls).
    support_ref = jnp.dot(features, weight, precision=jax.lax.Precision.HIGHEST)
    agg_ref = jnp.dot(adj, support_ref, precision=jax.lax.Precision.HIGHEST)
    ref_relu = jnp.maximum(agg_ref, 0.0)

    # Default path: bf16 traffic, f32 accumulation.
    out_bf16 = jax.block_until_ready(
        gcn_layer_forward(features, adj, weight, active=True))
    assert out_bf16.shape == (N, F_out)
    assert bool(jnp.allclose(out_bf16, ref_relu, atol=5e-2, rtol=5e-2)), \
        "bf16-path mismatch vs reference"

    # Full-f32 path (closest to the PyTorch module's numerics).
    out_f32 = jax.block_until_ready(
        gcn_layer_forward(features, adj, weight, active=True,
                          compute_dtype="float32"))
    assert bool(jnp.allclose(out_f32, ref_relu, atol=1e-3, rtol=1e-3)), \
        "f32-path mismatch vs reference"

    # Non-activated path.
    out_lin = jax.block_until_ready(
        gcn_layer_forward(features, adj, weight, active=False,
                          compute_dtype="float32"))
    assert bool(jnp.allclose(out_lin, agg_ref, atol=1e-3, rtol=1e-3)), \
        "linear-path mismatch vs reference"

    print("KERNEL_OK")
</pallas_src>

<mosaic_0001>
module attributes {stable_mosaic.version = 11 : i64} {
  func.func @_project_kernel(%arg0: i32, %arg1: memref<256x128xbf16, #tpu.memory_space<vmem>>, %arg2: memref<128x128xbf16, #tpu.memory_space<vmem>>, %arg3: memref<256x128xbf16, #tpu.memory_space<vmem>>) attributes {dimension_semantics = [#tpu.dimension_semantics<parallel>], iteration_bounds = array<i64: 1>, scalar_prefetch = 0 : i64, scratch_operands = 0 : i64, tpu.core_type = #tpu.core_type<tc>, window_params = [{transform_indices = @transform_0, window_bounds = array<i64: 256, 128>}, {pipeline_mode = #tpu.pipeline_mode<synchronous>, transform_indices = @transform_1, window_bounds = array<i64: 128, 128>}, {transform_indices = @transform_2, window_bounds = array<i64: 256, 128>}]} {
    %c0 = arith.constant 0 : index
    %c0_0 = arith.constant 0 : index
    %0 = vector.load %arg1[%c0, %c0_0] : memref<256x128xbf16, #tpu.memory_space<vmem>>, vector<256x128xbf16>
    %c0_1 = arith.constant 0 : index
    %c0_2 = arith.constant 0 : index
    %1 = vector.load %arg2[%c0_1, %c0_2] : memref<128x128xbf16, #tpu.memory_space<vmem>>, vector<128x128xbf16>
    %cst = arith.constant dense<0.000000e+00> : vector<256x128xf32>
    %2 = tpu.matmul %0, %1, %cst {dimension_numbers = #tpu.dot_dimension_numbers<[1], [0], [0], [1], [0, 0, 1, 1], [], []>} : vector<256x128xbf16>, vector<128x128xbf16>, vector<256x128xf32> -> vector<256x128xf32>
    %3 = arith.truncf %2 : vector<256x128xf32> to vector<256x128xbf16>
    %c0_3 = arith.constant 0 : index
    %c0_4 = arith.constant 0 : index
    %4 = vector.load %arg3[%c0_3, %c0_4] : memref<256x128xbf16, #tpu.memory_space<vmem>>, vector<256x128xbf16>
    tpu.vector_store %arg3[%c0_3, %c0_4], %3 {strides = array<i32>} : memref<256x128xbf16, #tpu.memory_space<vmem>>, vector<256x128xbf16>,
    return
  }
  func.func @transform_0(%arg0: i32) -> (i32, i32) {
    %c0_i32 = arith.constant 0 : i32
    %c0_i32_0 = arith.constant 0 : i32
    return %arg0, %c0_i32 : i32, i32
  }
  func.func @transform_1(%arg0: i32) -> (i32, i32) {
    %c0_i32 = arith.constant 0 : i32
    %c0_i32_0 = arith.constant 0 : i32
    %c0_i32_1 = arith.constant 0 : i32
    return %c0_i32, %c0_i32_0 : i32, i32
  }
  func.func @transform_2(%arg0: i32) -> (i32, i32) {
    %c0_i32 = arith.constant 0 : i32
    %c0_i32_0 = arith.constant 0 : i32
    return %arg0, %c0_i32 : i32, i32
  }
}

module attributes {stable_mosaic.version = 11 : i64} {
  func.func @_aggregate_kernel(%arg0: i32, %arg1: i32, %arg2: memref<128x256xbf16, #tpu.memory_space<vmem>>, %arg3: memref<256x128xbf16, #tpu.memory_space<vmem>>, %arg4: memref<128x128xf32, #tpu.memory_space<vmem>>, %arg5: memref<128x128xf32, #tpu.memory_space<vmem>>) attributes {dimension_semantics = [#tpu.dimension_semantics<parallel>, #tpu.dimension_semantics<arbitrary>], iteration_bounds = array<i64: 2, 1>, scalar_prefetch = 0 : i64, scratch_operands = 1 : i64, tpu.core_type = #tpu.core_type<tc>, window_params = [{transform_indices = @transform_0, window_bounds = array<i64: 128, 256>}, {transform_indices = @transform_1, window_bounds = array<i64: 256, 128>}, {transform_indices = @transform_2, window_bounds = array<i64: 128, 128>}]} {
    %c0_i32 = arith.constant 0 : i32
    %0 = arith.cmpi eq, %arg1, %c0_i32 : i32
    %1 = arith.extui %0 : i1 to i32
    %c0_i32_0 = arith.constant 0 : i32
    %2 = arith.cmpi ne, %1, %c0_i32_0 : i32
    scf.if %2 {
      %cst_10 = arith.constant 0.000000e+00 : f32
      %12 = vector.broadcast %cst_10 : f32 to vector<128x128xf32>
      %c0_11 = arith.constant 0 : index
      %c0_12 = arith.constant 0 : index
      %13 = vector.load %arg5[%c0_11, %c0_12] : memref<128x128xf32, #tpu.memory_space<vmem>>, vector<128x128xf32>
      tpu.vector_store %arg5[%c0_11, %c0_12], %12 {strides = array<i32>} : memref<128x128xf32, #tpu.memory_space<vmem>>, vector<128x128xf32>,
    } else {
    }
    %c0 = arith.constant 0 : index
    %c0_1 = arith.constant 0 : index
    %3 = vector.load %arg5[%c0, %c0_1] : memref<128x128xf32, #tpu.memory_space<vmem>>, vector<128x128xf32>
    %c0_2 = arith.constant 0 : index
    %c0_3 = arith.constant 0 : index
    %4 = vector.load %arg2[%c0_2, %c0_3] : memref<128x256xbf16, #tpu.memory_space<vmem>>, vector<128x256xbf16>
    %c0_4 = arith.constant 0 : index
    %c0_5 = arith.constant 0 : index
    %5 = vector.load %arg3[%c0_4, %c0_5] : memref<256x128xbf16, #tpu.memory_space<vmem>>, vector<256x128xbf16>
    %cst = arith.constant dense<0.000000e+00> : vector<128x128xf32>
    %6 = tpu.matmul %4, %5, %cst {dimension_numbers = #tpu.dot_dimension_numbers<[1], [0], [0], [1], [0, 0, 1, 1], [], []>} : vector<128x256xbf16>, vector<256x128xbf16>, vector<128x128xf32> -> vector<128x128xf32>
    %7 = arith.addf %3, %6 : vector<128x128xf32>
    %c0_6 = arith.constant 0 : index
    %c0_7 = arith.constant 0 : index
    %8 = vector.load %arg5[%c0_6, %c0_7] : memref<128x128xf32, #tpu.memory_space<vmem>>, vector<128x128xf32>
    tpu.vector_store %arg5[%c0_6, %c0_7], %7 {strides = array<i32>} : memref<128x128xf32, #tpu.memory_space<vmem>>, vector<128x128xf32>,
    %c0_i32_8 = arith.constant 0 : i32
    %9 = arith.cmpi eq, %arg1, %c0_i32_8 : i32
    %10 = arith.extui %9 : i1 to i32
    %c0_i32_9 = arith.constant 0 : i32
    %11 = arith.cmpi ne, %10, %c0_i32_9 : i32
    scf.if %11 {
      %c0_10 = arith.constant 0 : index
      %c0_11 = arith.constant 0 : index
      %12 = vector.load %arg5[%c0_10, %c0_11] : memref<128x128xf32, #tpu.memory_space<vmem>>, vector<128x128xf32>
      %cst_12 = arith.constant 0.000000e+00 : f32
      %13 = vector.broadcast %cst_12 : f32 to vector<128x128xf32>
      %14 = arith.maximumf %12, %13 : vector<128x128xf32>
      %c0_13 = arith.constant 0 : index
      %c0_14 = arith.constant 0 : index
      %15 = vector.load %arg4[%c0_13, %c0_14] : memref<128x128xf32, #tpu.memory_space<vmem>>, vector<128x128xf32>
      tpu.vector_store %arg4[%c0_13, %c0_14], %14 {strides = array<i32>} : memref<128x128xf32, #tpu.memory_space<vmem>>, vector<128x128xf32>,
    } else {
    }
    return
  }
  func.func @transform_0(%arg0: i32, %arg1: i32) -> (i32, i32) {
    %c0_i32 = arith.constant 0 : i32
    return %arg0, %arg1 : i32, i32
  }
  func.func @transform_1(%arg0: i32, %arg1: i32) -> (i32, i32) {
    %c0_i32 = arith.constant 0 : i32
    %c0_i32_0 = arith.constant 0 : i32
    return %arg1, %c0_i32 : i32, i32
  }
  func.func @transform_2(%arg0: i32, %arg1: i32) -> (i32, i32) {
    %c0_i32 = arith.constant 0 : i32
    %c0_i32_0 = arith.constant 0 : i32
    return %arg0, %c0_i32 : i32, i32
  }
}

</mosaic_0001>

<bundles_post_ra>
// kernel: gcn_layer_forward.3
= control target key start
LH: loop header
LB: loop body
LE: loop exit
PB: predicated region body
PF: predicated region fallthrough
CT: control target
= control target key end

     0   :  { %7 = vsyncpa [#allocation4], 0  ;;  %s1294_s0 = inlined_call_operand.vmem [shape: bf16[256,256], index: 0, kind: input, shape index: {}]   ;;  %s1295_s1 = inlined_call_operand.vmem [shape: bf16[256,128], index: 1, kind: input, shape index: {}]   ;;  %s1296_s2 = inlined_call_operand.hbm [shape: f32[256,128], index: 2, kind: output, shape index: {}]  }
   0x1   :  { %9 = vsyncpa [#allocation4 + $0x1], 0  ;;  %s1093_s9 = smov 0   ;;  %s1095_s10 = smov 0  }
   0x2   :  { %s1097_s11 = smov 0   ;;  %s1099_s12 = smov 0  }
   0x3   :  { %s1101_s13 = smov 0   ;;  %s1103_s14 = smov 0  }
   0x4 LB: > { %s746_s15 = sadd.s32 4294967295, %s1074_s14   ;;  %s747_s16 = sadd.s32 4294967294, %s1074_s14   ;;  %s1074_s14 = sphi %s1103_s14, %s15_s14   ;;  %s1070_s13 = sphi %s1101_s13, %s1303_s13   ;;  %s1066_s12 = sphi %s1099_s12, %s1302_s12   ;;  %s1062_s11 = sphi %s1097_s11, %s1301_s11   ;;  %s1058_s10 = sphi %s1095_s10, %s1300_s10   ;;  %s1054_s9 = sphi %s1093_s9, %s1299_s9  }
   0x5   : > { %s27_s17 = sadd.s32 1, %s1070_s13  ;;  %s88_s18 = sadd.s32 1, %s1062_s11 }
   0x6   : > { %p29_p0 = scmp.ge.s32.totalorder %s27_s17, 2  ;;  %p98_p1 = scmp.ne.s32.totalorder %s1062_s11, %s1058_s10 }
   0x7   : > { %p99_p2 = scmp.eq.s32.totalorder %s746_s15, 1  ;;  %p104_p3 = scmp.ne.s32.totalorder %s1058_s10, %s1054_s9 }
   0x8   : > { %s1305_s17 = smov (%p29_p0, %s27_s17), 0  ;;  %p105_p5 = scmp.eq.s32.totalorder %s747_s16, 1 }
   0x9   : > { %p1133_p4 = por %p99_p2, %p98_p1  ;;  %s85_s20 = ssub.s32 %s1070_s13, %s1305_s17 }
   0xa   : > { %p751_p6 = scmp.ge.s32.totalorder %s1074_s14, 1  ;;  %p86_p7 = scmp.eq.s32.totalorder %s85_s20, 0 }
   0xb   : > { %p1140_p8 = por %p105_p5, %p104_p3  ;;  %p147_p9 = scmp.lt.s32.totalorder %s1074_s14, 3 }
   0xc   : > { %s1146_s22 = scalar_select %p86_p7, %s1062_s11, %s88_s18  }
   0xd   : > { %p148_p10 = pnand %p751_p6, %p147_p9 }
   0xe   : > { %s753_s7 = sshll.u32 (!%p148_p10), %s1066_s12, 4  ;;  %s176_s24 = sand.u32 (!%p148_p10), 1, %s1058_s10  }
   0xf   : > { %151 = sbr.rel (%p148_p10) target bundleno = 249 (0xf9), region = 28  ;;  %p181_p11 = scmp.lt.s32.totalorder (!%p148_p10), %s753_s7, 31 }
  0x10   : > { %s752_s25 = sshll.u32 (!%p148_p10), %s176_s24, 7  ;;  %s922_s27 = sshll.u32 (!%p148_p10), %s1066_s12, 7 }
  0x11   : > { %s1237_s26 = scalar_lea.vmem (!%p148_p10), [#allocation3], %s752_s25  ;;  %s640_s12 = scalar_lea.sflag (!%p148_p10), [#allocation4], %s176_s24 }
  0x12   : > { %s652_s3 = sshll.u32 (!%p148_p10), %s1237_s26, 4  ;;  %s1016_s15 = scalar_lea.hbm (!%p148_p10), %s1296_s2, 256  ;;  %s653_s3 = int_to_ptr.vmem [resolvable:$true] %s652_s3 }
  0x14   : > { %v913_v0 = vld [vmem:[%s1295_s1 + $0x38] sm:$0xff]  ;;  %v912_v2 = vld [vmem:[%s1295_s1 + $0x30] sm:$0xff]  ;;  %v911_v4 = vld [vmem:[%s1295_s1 + $0x28] sm:$0xff]  ;;  %s1307_s7 = smov (!%p181_p11, %s753_s7), 31 }
  0x15   : > { %v921_v1 = vld [vmem:[%s1295_s1 + $0x78] sm:$0xff]  ;;  %458 = vmatpush.bf16.msra.mxu0 %v913_v0  ;;  %923 = vmatpush.bf16.msra.mxu2 %v913_v0  ;;  %v920_v3 = vld [vmem:[%s1295_s1 + $0x70] sm:$0xff]  ;;  %v919_v5 = vld [vmem:[%s1295_s1 + $0x68] sm:$0xff]  ;;  %s889_s30 = sshll.u32 %s1307_s7, 3 }
  0x16   : > { %507 = vmatpush.bf16.msra.mxu1 %v921_v1  ;;  %931 = vmatpush.bf16.msra.mxu3 %v921_v1  ;;  %v910_v6 = vld [vmem:[%s1295_s1 + $0x20] sm:$0xff]  ;;  %v909_v8 = vld [vmem:[%s1295_s1 + $0x18] sm:$0xff]  ;;  %v908_v10 = vld [vmem:[%s1295_s1 + $0x10] sm:$0xff]  ;;  %s1191_s8 = scalar_lea.vmem %s1294_s0, %s889_s30  ;;  %s651_s30 = scalar_lea.hbm %s1296_s2, %s922_s27 }
  0x17   : > { %v918_v7 = vld [vmem:[%s1295_s1 + $0x60] sm:$0xff]  ;;  %v917_v9 = vld [vmem:[%s1295_s1 + $0x58] sm:$0xff]  ;;  %v916_v11 = vld [vmem:[%s1295_s1 + $0x50] sm:$0xff]  ;;  %s654_s4 = sshll.u32 %s651_s30, 4  ;;  %s655_s4 = int_to_ptr.hbm [resolvable:$true] %s654_s4 }
  0x18   : > { %v907_v12 = vld [vmem:[%s1295_s1 + $0x8] sm:$0xff]  ;;  %v906_v14 = vld [vmem:[%s1295_s1] sm:$0xff]  ;;  %v766_v28 = vld [vmem:[%s1191_s8 + $0x10] sm:$0xf]  ;;  %s1010_s5 = sshra.s32 %s655_s4, 4  ;;  %s1011_s5 = int_to_ptr.hbm [resolvable:$true] %s1010_s5 }
  0x19   : > { %459 = vmatpush.bf16.msra.mxu0 %v912_v2  ;;  %924 = vmatpush.bf16.msra.mxu2 %v912_v2  ;;  %v915_v13 = vld [vmem:[%s1295_s1 + $0x48] sm:$0xff]  ;;  %v914_v15 = vld [vmem:[%s1295_s1 + $0x40] sm:$0xff]  ;;  %v893_v29 = vld [vmem:[%s1191_s8 + $0x14] sm:$0xf0]  ;;  %s1012_s6 = scalar_lea.hbm %s1011_s5, 128  ;;  %p1017_p1 = scmp.lt.s32.totalorder %s1011_s5, %s1296_s2 }
  0x1a   : > { %508 = vmatpush.bf16.msra.mxu1 %v920_v3  ;;  %932 = vmatpush.bf16.msra.mxu3 %v920_v3  ;;  %v758_v16 = vld [vmem:[%s1191_s8] sm:$0xf]  ;;  %v891_v17 = vld [vmem:[%s1191_s8 + $0x4] sm:$0xf0]  ;;  %v890_v20 = vld [vmem:[%s1191_s8 + $0x4] sm:$0xf]  ;;  %v767_v36 = vor.u32 %v893_v29, %v766_v28  ;;  %p1013_p12 = scmp.ne.s32.totalorder %s1011_s5, %s1012_s6  ;;  %p1018_p2 = scmp.lt.s32.totalorder %s1016_s15, %s1012_s6 }
  0x1b   : > { %v790_v18 = vld [vmem:[%s1191_s8 + $0x40] sm:$0xf]  ;;  %v899_v19 = vld [vmem:[%s1191_s8 + $0x44] sm:$0xf0]  ;;  %v760_v21 = vld [vmem:[%s1191_s8 + $0x8] sm:$0xf0]  ;;  %v759_v24 = vor.u32 %v891_v17, %v758_v16 }
  0x1c   : > { %v898_v22 = vld [vmem:[%s1191_s8 + $0x44] sm:$0xf]  ;;  %v792_v23 = vld [vmem:[%s1191_s8 + $0x48] sm:$0xf0]  ;;  %v791_v25 = vor.u32 %v899_v19, %v790_v18  ;;  %v763_v26 = vor.u32 %v890_v20, %v760_v21  ;;  %v798_v30 = vld [vmem:[%s1191_s8 + $0x50] sm:$0xf]  ;;  %p1014_p13 = pnand %p1013_p12, %p1133_p4  ;;  %p1019_p3 = por %p1018_p2, %p1017_p1 }
  0x1d   : > { %460 = vmatpush.bf16.msra.mxu0 %v911_v4  ;;  %925 = vmatpush.bf16.msra.mxu2 %v911_v4  ;;  %v795_v27 = vor.u32 %v898_v22, %v792_v23  ;;  %v901_v31 = vld [vmem:[%s1191_s8 + $0x54] sm:$0xf0]  ;;  %v892_v32 = vld [vmem:[%s1191_s8 + $0x14] sm:$0xf]  ;;  %v768_v33 = vld [vmem:[%s1191_s8 + $0x18] sm:$0xf0] }
  0x1e   : > { %509 = vmatpush.bf16.msra.mxu1 %v919_v5  ;;  %933 = vmatpush.bf16.msra.mxu3 %v919_v5  ;;  %v900_v34 = vld [vmem:[%s1191_s8 + $0x54] sm:$0xf]  ;;  %v800_v35 = vld [vmem:[%s1191_s8 + $0x58] sm:$0xf0]  ;;  %v799_v37 = vor.u32 %v901_v31, %v798_v30  ;;  %v771_v38 = vor.u32 %v892_v32, %v768_v33  ;;  %v774_v40 = vld [vmem:[%s1191_s8 + $0x20] sm:$0xf]  ;;  %p1015_p0 = pneg %p1014_p13 }
  0x1f   : > { %v803_v39 = vor.u32 %v900_v34, %v800_v35  ;;  %v895_v41 = vld [vmem:[%s1191_s8 + $0x24] sm:$0xf0]  ;;  %v806_v42 = vld [vmem:[%s1191_s8 + $0x60] sm:$0xf]  ;;  %v894_v44 = vld [vmem:[%s1191_s8 + $0x24] sm:$0xf] }
  0x20   : > { %v903_v43 = vld [vmem:[%s1191_s8 + $0x64] sm:$0xf0]  ;;  %v776_v45 = vld [vmem:[%s1191_s8 + $0x28] sm:$0xf0]  ;;  %v902_v46 = vld [vmem:[%s1191_s8 + $0x64] sm:$0xf]  ;;  %v775_v48 = vor.u32 %v895_v41, %v774_v40  ;;  %p1020_p5 = pnand %p1019_p3, %p1015_p0 }
  0x21   : > { %461 = vmatpush.bf16.msra.mxu0 %v910_v6  ;;  %926 = vmatpush.bf16.msra.mxu2 %v910_v6  ;;  %v808_v47 = vld [vmem:[%s1191_s8 + $0x68] sm:$0xf0]  ;;  %v807_v49 = vor.u32 %v903_v43, %v806_v42  ;;  %v779_v50 = vor.u32 %v894_v44, %v776_v45  ;;  %v782_v52 = vld [vmem:[%s1191_s8 + $0x30] sm:$0xf]  ;;  %v897_v53 = vld [vmem:[%s1191_s8 + $0x34] sm:$0xf0] }
  0x22   : > { %510 = vmatpush.bf16.msra.mxu1 %v918_v7  ;;  %934 = vmatpush.bf16.msra.mxu3 %v918_v7  ;;  %v811_v51 = vor.u32 %v902_v46, %v808_v47  ;;  %v814_v54 = vld [vmem:[%s1191_s8 + $0x70] sm:$0xf]  ;;  %v905_v55 = vld [vmem:[%s1191_s8 + $0x74] sm:$0xf0]  ;;  %v896_v56 = vld [vmem:[%s1191_s8 + $0x34] sm:$0xf]  ;;  %v783_v60 = vor.u32 %v897_v53, %v782_v52 }
  0x23   : > { %v784_v57 = vld [vmem:[%s1191_s8 + $0x38] sm:$0xf0]  ;;  %v904_v58 = vld [vmem:[%s1191_s8 + $0x74] sm:$0xf]  ;;  %v815_v61 = vor.u32 %v905_v55, %v814_v54 }
  0x24   : > { %v816_v59 = vld [vmem:[%s1191_s8 + $0x78] sm:$0xf0]  ;;  %v787_v62 = vor.u32 %v896_v56, %v784_v57 }
  0x25   : > { %462 = vmatpush.bf16.msra.mxu0 %v909_v8  ;;  %927 = vmatpush.bf16.msra.mxu2 %v909_v8  ;;  %v819_v63 = vor.u32 %v904_v58, %v816_v59 }
  0x26   : > { %511 = vmatpush.bf16.msra.mxu1 %v917_v9  ;;  %935 = vmatpush.bf16.msra.mxu3 %v917_v9 }
  0x29   : > { %463 = vmatpush.bf16.msra.mxu0 %v908_v10  ;;  %928 = vmatpush.bf16.msra.mxu2 %v908_v10 }
  0x2a   : > { %512 = vmatpush.bf16.msra.mxu1 %v916_v11  ;;  %936 = vmatpush.bf16.msra.mxu3 %v916_v11 }
  0x2d   : > { %464 = vmatpush.bf16.msra.mxu0 %v907_v12  ;;  %929 = vmatpush.bf16.msra.mxu2 %v907_v12 }
  0x2e   : > { %513 = vmatpush.bf16.msra.mxu1 %v915_v13  ;;  %937 = vmatpush.bf16.msra.mxu3 %v915_v13 }
  0x31   : > { %465 = vmatpush.bf16.msra.mxu0 %v906_v14  ;;  %930 = vmatpush.bf16.msra.mxu2 %v906_v14 }
  0x32   : > { %514 = vmatpush.bf16.msra.mxu1 %v914_v15  ;;  %938 = vmatpush.bf16.msra.mxu3 %v914_v15 }
  0x34   : > { %466 = vmatmul.bf16.vlgmr.msra.gmra.mxu0 %v759_v24  ;;  %486 = vmatmul.bf16.vlgmr.msra.gmra.mxu2 %v791_v25 }
  0x35   : > { %515 = vmatmul.bf16.vlgmr.msra.gmra.mxu1 %v763_v26  ;;  %535 = vmatmul.bf16.vlgmr.msra.gmra.mxu3 %v795_v27 }
  0x44   : > { %471 = vmatmul.bf16.gmra.mxu0 %v767_v36  ;;  %491 = vmatmul.bf16.gmra.mxu2 %v799_v37 }
  0x45   : > { %520 = vmatmul.bf16.gmra.mxu1 %v771_v38  ;;  %540 = vmatmul.bf16.gmra.mxu3 %v803_v39 }
  0x54   : > { %476 = vmatmul.bf16.gmra.mxu0 %v775_v48  ;;  %496 = vmatmul.bf16.gmra.mxu2 %v807_v49 }
  0x55   : > { %525 = vmatmul.bf16.gmra.mxu1 %v779_v50  ;;  %545 = vmatmul.bf16.gmra.mxu3 %v811_v51 }
  0x64   : > { %481 = vmatmul.bf16.gmra.mxu0 %v783_v60  ;;  %501 = vmatmul.bf16.gmra.mxu2 %v815_v61 }
  0x65   : > { %530 = vmatmul.bf16.gmra.mxu1 %v787_v62  ;;  %550 = vmatmul.bf16.gmra.mxu3 %v819_v63 }
  0xb1   : > { %v467_v0 = vpop.f32.mrf.mxu0 }
  0xb2   : > { %v516_v1 = vpop.f32.mrf.mxu1 }
  0xb3   : > { %v517_v2 = vadd.f32 %v516_v1, %v467_v0 }
  0xb5   : > { %v607_v3 = vmax.f32 %v517_v2, 0.0 }
  0xb7   : > { %623 = vst [vmem:[%s1237_s26] sm:$0xff] %v607_v3  ;;  %v487_v4 = vpop.f32.mrf.mxu2 }
  0xb8   : > { %v536_v5 = vpop.f32.mrf.mxu3 }
  0xb9   : > { %v537_v6 = vadd.f32 %v536_v5, %v487_v4  ;;  %v469_v7 = vpop.f32.mrf.mxu0 }
  0xba   : > { %v518_v8 = vpop.f32.mrf.mxu1 }
  0xbb   : > { %v615_v9 = vmax.f32 %v537_v6, 0.0  ;;  %v519_v10 = vadd.f32 %v518_v8, %v469_v7 }
  0xbd   : > { %631 = vst [vmem:[%s1237_s26 + $0x40] sm:$0xff] %v615_v9  ;;  %v608_v11 = vmax.f32 %v519_v10, 0.0 }
  0xbf   : > { %624 = vst [vmem:[%s1237_s26 + $0x8] sm:$0xff] %v608_v11  ;;  %v489_v12 = vpop.f32.mrf.mxu2 }
  0xc0   : > { %v538_v13 = vpop.f32.mrf.mxu3 }
  0xc1   : > { %v539_v14 = vadd.f32 %v538_v13, %v489_v12  ;;  %v472_v15 = vpop.f32.mrf.mxu0 }
  0xc2   : > { %v521_v16 = vpop.f32.mrf.mxu1 }
  0xc3   : > { %v616_v17 = vmax.f32 %v539_v14, 0.0  ;;  %v522_v18 = vadd.f32 %v521_v16, %v472_v15 }
  0xc5   : > { %632 = vst [vmem:[%s1237_s26 + $0x48] sm:$0xff] %v616_v17  ;;  %v609_v19 = vmax.f32 %v522_v18, 0.0 }
  0xc7   : > { %625 = vst [vmem:[%s1237_s26 + $0x10] sm:$0xff] %v609_v19  ;;  %v492_v20 = vpop.f32.mrf.mxu2 }
  0xc8   : > { %v541_v21 = vpop.f32.mrf.mxu3 }
  0xc9   : > { %v542_v22 = vadd.f32 %v541_v21, %v492_v20  ;;  %v474_v23 = vpop.f32.mrf.mxu0 }
  0xca   : > { %v523_v24 = vpop.f32.mrf.mxu1 }
  0xcb   : > { %v617_v25 = vmax.f32 %v542_v22, 0.0  ;;  %v524_v26 = vadd.f32 %v523_v24, %v474_v23 }
  0xcd   : > { %633 = vst [vmem:[%s1237_s26 + $0x50] sm:$0xff] %v617_v25  ;;  %v610_v27 = vmax.f32 %v524_v26, 0.0 }
  0xcf   : > { %626 = vst [vmem:[%s1237_s26 + $0x18] sm:$0xff] %v610_v27  ;;  %v494_v28 = vpop.f32.mrf.mxu2 }
  0xd0   : > { %v543_v29 = vpop.f32.mrf.mxu3 }
  0xd1   : > { %v544_v30 = vadd.f32 %v543_v29, %v494_v28  ;;  %v477_v31 = vpop.f32.mrf.mxu0 }
  0xd2   : > { %v526_v32 = vpop.f32.mrf.mxu1 }
  0xd3   : > { %v618_v33 = vmax.f32 %v544_v30, 0.0  ;;  %v527_v34 = vadd.f32 %v526_v32, %v477_v31 }
  0xd5   : > { %634 = vst [vmem:[%s1237_s26 + $0x58] sm:$0xff] %v618_v33  ;;  %v611_v35 = vmax.f32 %v527_v34, 0.0 }
  0xd7   : > { %627 = vst [vmem:[%s1237_s26 + $0x20] sm:$0xff] %v611_v35  ;;  %v497_v36 = vpop.f32.mrf.mxu2 }
  0xd8   : > { %v546_v37 = vpop.f32.mrf.mxu3 }
  0xd9   : > { %v547_v38 = vadd.f32 %v546_v37, %v497_v36  ;;  %v479_v39 = vpop.f32.mrf.mxu0 }
  0xda   : > { %v528_v40 = vpop.f32.mrf.mxu1 }
  0xdb   : > { %v619_v41 = vmax.f32 %v547_v38, 0.0  ;;  %v529_v42 = vadd.f32 %v528_v40, %v479_v39 }
  0xdd   : > { %635 = vst [vmem:[%s1237_s26 + $0x60] sm:$0xff] %v619_v41  ;;  %v612_v43 = vmax.f32 %v529_v42, 0.0 }
  0xdf   : > { %628 = vst [vmem:[%s1237_s26 + $0x28] sm:$0xff] %v612_v43  ;;  %v499_v44 = vpop.f32.mrf.mxu2 }
  0xe0   : > { %v548_v45 = vpop.f32.mrf.mxu3 }
  0xe1   : > { %v549_v46 = vadd.f32 %v548_v45, %v499_v44  ;;  %v482_v47 = vpop.f32.mrf.mxu0 }
  0xe2   : > { %v531_v48 = vpop.f32.mrf.mxu1 }
  0xe3   : > { %v620_v49 = vmax.f32 %v549_v46, 0.0  ;;  %v532_v50 = vadd.f32 %v531_v48, %v482_v47 }
  0xe5   : > { %636 = vst [vmem:[%s1237_s26 + $0x68] sm:$0xff] %v620_v49  ;;  %v613_v51 = vmax.f32 %v532_v50, 0.0 }
  0xe7   : > { %629 = vst [vmem:[%s1237_s26 + $0x30] sm:$0xff] %v613_v51  ;;  %v502_v52 = vpop.f32.mrf.mxu2 }
  0xe8   : > { %v551_v53 = vpop.f32.mrf.mxu3 }
  0xe9   : > { %v552_v54 = vadd.f32 %v551_v53, %v502_v52  ;;  %v484_v55 = vpop.f32.mrf.mxu0 }
  0xea   : > { %v533_v56 = vpop.f32.mrf.mxu1 }
  0xeb   : > { %v621_v57 = vmax.f32 %v552_v54, 0.0  ;;  %v534_v58 = vadd.f32 %v533_v56, %v484_v55 }
  0xed   : > { %637 = vst [vmem:[%s1237_s26 + $0x70] sm:$0xff] %v621_v57  ;;  %v614_v59 = vmax.f32 %v534_v58, 0.0 }
  0xef   : > { %630 = vst [vmem:[%s1237_s26 + $0x38] sm:$0xff] %v614_v59  ;;  %v504_v60 = vpop.f32.mrf.mxu2 }
  0xf0   : > { %v553_v61 = vpop.f32.mrf.mxu3 }
  0xf1   : > { %v554_v62 = vadd.f32 %v553_v61, %v504_v60 }
  0xf3   : > { %v622_v63 = vmax.f32 %v554_v62, 0.0 }
  0xf5   : > { %638 = vst [vmem:[%s1237_s26 + $0x78] sm:$0xff] %v622_v63 }
  0xf6   : > { %1023 = shalt.err (!%p1020_p5)
}
  0xf7   : > { %s1076_s20 = smov 128   ;;  %s1077_s23 = smov 8  }
  0xf8   : > { %939 = dma.vmem_to_hbm [thread:$0]  (%p1133_p4), %s653_s3, 2048, %s655_s4, %s640_s12, %s1076_s20, %s1076_s20, %s1077_s23  }
  0xf9 PF: > { %p945_p6 = scmp.ge.s32.totalorder %s1074_s14, 2  ;;  %s669_s24 = sand.u32 1, %s1054_s9  }
  0xfa   : > { %s670_s25 = scalar_lea.sflag [#allocation4], %s669_s24 }
  0xfb   : > { %p942_p7 = pnand %p945_p6, %p1140_p8 }
  0xfd   : > { %p943_p9 = pneg %p942_p7 }
  0xff   : > { %1049 = dma.done.wait (%p943_p9), %s670_s25, 2048  }
 0x100   : > { %1051 = vsyncadd (%p943_p9), %s670_s25, 4294965248  ;;  %s15_s14 = sadd.s32 1, %s1074_s14   ;;  %s1299_s9 = smov %s1058_s10 }
 0x101   : > { %p12_p10 = scmp.ge.s32.totalorder %s15_s14, 4   ;;  %s1300_s10 = smov %s1062_s11 }
 0x102   : > { %s1301_s11 = smov %s1146_s22  ;;  %s1302_s12 = smov %s1070_s13 }
 0x103   : > { %s1303_s13 = smov %s1305_s17  ;;  %14 = sbr.rel (!%p12_p10) target bundleno = 4 (0x4), region = 74 }
 0x108   :  { %676 = vsyncpa [#allocation4], 1 }
 0x109   :  { %678 = vsyncpa [#allocation4 + $0x1], 1 }

// kernel: gcn_layer_forward.2
= control target key start
LH: loop header
LB: loop body
LE: loop exit
PB: predicated region body
PF: predicated region fallthrough
CT: control target
= control target key end

     0   :  { %s734_s1 = inlined_call_operand.vmem [shape: bf16[128,128], index: 1, kind: input, shape index: {}]   ;;  %s735_s0 = inlined_call_operand.vmem [shape: bf16[256,128], index: 0, kind: input, shape index: {}]   ;;  %s736_s2 = inlined_call_operand.vmem [shape: bf16[256,128], index: 2, kind: output, shape index: {}]  }
   0x1   :  { %v479_v0 = vld [vmem:[%s734_s1 + $0x38] sm:$0xff]  ;;  %v478_v1 = vld [vmem:[%s734_s1 + $0x30] sm:$0xff]  ;;  %v477_v2 = vld [vmem:[%s734_s1 + $0x28] sm:$0xff] }
   0x2   :  { %203 = vmatpush.bf16.msra.mxu0 %v479_v0  ;;  %575 = vmatpush.bf16.msra.mxu1 %v479_v0  ;;  %v476_v3 = vld [vmem:[%s734_s1 + $0x20] sm:$0xff]  ;;  %v475_v4 = vld [vmem:[%s734_s1 + $0x18] sm:$0xff]  ;;  %v474_v5 = vld [vmem:[%s734_s1 + $0x10] sm:$0xff] }
   0x3   :  { %576 = vmatpush.bf16.msra.mxu2 %v479_v0  ;;  %577 = vmatpush.bf16.msra.mxu3 %v479_v0  ;;  %v473_v6 = vld [vmem:[%s734_s1 + $0x8] sm:$0xff]  ;;  %v472_v7 = vld [vmem:[%s734_s1] sm:$0xff]  ;;  %v458_v16 = vld [vmem:[%s735_s0 + $0x10] sm:$0xff] }
   0x4   :  { %v456_v8 = vld [vmem:[%s735_s0] sm:$0xff]  ;;  %v457_v12 = vld [vmem:[%s735_s0 + $0x8] sm:$0xff]  ;;  %v462_v17 = vld [vmem:[%s735_s0 + $0x30] sm:$0xff] }
   0x5   :  { %v460_v9 = vld [vmem:[%s735_s0 + $0x20] sm:$0xff]  ;;  %v461_v13 = vld [vmem:[%s735_s0 + $0x28] sm:$0xff]  ;;  %v466_v18 = vld [vmem:[%s735_s0 + $0x50] sm:$0xff] }
   0x6   :  { %204 = vmatpush.bf16.msra.mxu0 %v478_v1  ;;  %578 = vmatpush.bf16.msra.mxu1 %v478_v1  ;;  %v464_v10 = vld [vmem:[%s735_s0 + $0x40] sm:$0xff]  ;;  %v465_v14 = vld [vmem:[%s735_s0 + $0x48] sm:$0xff]  ;;  %v470_v19 = vld [vmem:[%s735_s0 + $0x70] sm:$0xff] }
   0x7   :  { %579 = vmatpush.bf16.msra.mxu2 %v478_v1  ;;  %580 = vmatpush.bf16.msra.mxu3 %v478_v1  ;;  %v468_v11 = vld [vmem:[%s735_s0 + $0x60] sm:$0xff]  ;;  %v469_v15 = vld [vmem:[%s735_s0 + $0x68] sm:$0xff]  ;;  %v459_v20 = vld [vmem:[%s735_s0 + $0x18] sm:$0xff] }
   0x8   :  { %v463_v21 = vld [vmem:[%s735_s0 + $0x38] sm:$0xff] }
   0x9   :  { %v467_v22 = vld [vmem:[%s735_s0 + $0x58] sm:$0xff] }
   0xa   :  { %205 = vmatpush.bf16.msra.mxu0 %v477_v2  ;;  %581 = vmatpush.bf16.msra.mxu1 %v477_v2  ;;  %v471_v23 = vld [vmem:[%s735_s0 + $0x78] sm:$0xff] }
   0xb   :  { %582 = vmatpush.bf16.msra.mxu2 %v477_v2  ;;  %583 = vmatpush.bf16.msra.mxu3 %v477_v2 }
   0xe   :  { %206 = vmatpush.bf16.msra.mxu0 %v476_v3  ;;  %584 = vmatpush.bf16.msra.mxu1 %v476_v3 }
   0xf   :  { %585 = vmatpush.bf16.msra.mxu2 %v476_v3  ;;  %586 = vmatpush.bf16.msra.mxu3 %v476_v3 }
  0x12   :  { %207 = vmatpush.bf16.msra.mxu0 %v475_v4  ;;  %587 = vmatpush.bf16.msra.mxu1 %v475_v4 }
  0x13   :  { %588 = vmatpush.bf16.msra.mxu2 %v475_v4  ;;  %589 = vmatpush.bf16.msra.mxu3 %v475_v4 }
  0x16   :  { %208 = vmatpush.bf16.msra.mxu0 %v474_v5  ;;  %590 = vmatpush.bf16.msra.mxu1 %v474_v5 }
  0x17   :  { %591 = vmatpush.bf16.msra.mxu2 %v474_v5  ;;  %592 = vmatpush.bf16.msra.mxu3 %v474_v5 }
  0x1a   :  { %209 = vmatpush.bf16.msra.mxu0 %v473_v6  ;;  %593 = vmatpush.bf16.msra.mxu1 %v473_v6 }
  0x1b   :  { %594 = vmatpush.bf16.msra.mxu2 %v473_v6  ;;  %595 = vmatpush.bf16.msra.mxu3 %v473_v6 }
  0x1e   :  { %210 = vmatpush.bf16.msra.mxu0 %v472_v7  ;;  %596 = vmatpush.bf16.msra.mxu1 %v472_v7 }
  0x1f   :  { %597 = vmatpush.bf16.msra.mxu2 %v472_v7  ;;  %598 = vmatpush.bf16.msra.mxu3 %v472_v7 }
  0x21   :  { %211 = vmatmul.bf16.vlgmr.msra.gmra.mxu0 %v456_v8  ;;  %231 = vmatmul.bf16.vlgmr.msra.gmra.mxu1 %v460_v9 }
  0x22   :  { %251 = vmatmul.bf16.vlgmr.msra.gmra.mxu2 %v464_v10  ;;  %271 = vmatmul.bf16.vlgmr.msra.gmra.mxu3 %v468_v11 }
  0x31   :  { %216 = vmatmul.bf16.gmra.mxu0 %v457_v12  ;;  %236 = vmatmul.bf16.gmra.mxu1 %v461_v13 }
  0x32   :  { %256 = vmatmul.bf16.gmra.mxu2 %v465_v14  ;;  %276 = vmatmul.bf16.gmra.mxu3 %v469_v15 }
  0x41   :  { %221 = vmatmul.bf16.gmra.mxu0 %v458_v16  ;;  %241 = vmatmul.bf16.gmra.mxu1 %v462_v17 }
  0x42   :  { %261 = vmatmul.bf16.gmra.mxu2 %v466_v18  ;;  %281 = vmatmul.bf16.gmra.mxu3 %v470_v19 }
  0x51   :  { %226 = vmatmul.bf16.gmra.mxu0 %v459_v20  ;;  %246 = vmatmul.bf16.gmra.mxu1 %v463_v21 }
  0x52   :  { %266 = vmatmul.bf16.gmra.mxu2 %v467_v22  ;;  %286 = vmatmul.bf16.gmra.mxu3 %v471_v23 }
  0x9e   :  { %v212_v24 = vpop.f32.mrf.mxu0  ;;  %v232_v25 = vpop.f32.mrf.mxu1 }
  0xa5   :  { %v252_v26 = vpop.f32.mrf.mxu2  ;;  %v272_v27 = vpop.f32.mrf.mxu3 }
  0xa6   :  { %v214_v28 = vpop.f32.mrf.mxu0  ;;  %v234_v29 = vpop.f32.mrf.mxu1 }
  0xa7   :  { %v483_v30 = vpack.c.bf16 %v214_v28, %v212_v24  ;;  %v503_v31 = vpack.c.bf16 %v234_v29, %v232_v25 }
  0xa9   :  { %484 = vst [vmem:[%s736_s2] sm:$0xff] %v483_v30  }
  0xaa   :  { %563 = vst [vmem:[%s736_s2 + $0x20] sm:$0xff] %v503_v31  }
  0xad   :  { %v254_v32 = vpop.f32.mrf.mxu2  ;;  %v274_v33 = vpop.f32.mrf.mxu3 }
  0xae   :  { %v523_v34 = vpack.c.bf16 %v254_v32, %v252_v26  ;;  %v543_v35 = vpack.c.bf16 %v274_v33, %v272_v27  ;;  %v217_v36 = vpop.f32.mrf.mxu0  ;;  %v237_v37 = vpop.f32.mrf.mxu1 }
  0xb0   :  { %567 = vst [vmem:[%s736_s2 + $0x40] sm:$0xff] %v523_v34  }
  0xb1   :  { %571 = vst [vmem:[%s736_s2 + $0x60] sm:$0xff] %v543_v35  }
  0xb5   :  { %v257_v38 = vpop.f32.mrf.mxu2  ;;  %v277_v39 = vpop.f32.mrf.mxu3 }
  0xb6   :  { %v219_v40 = vpop.f32.mrf.mxu0  ;;  %v239_v41 = vpop.f32.mrf.mxu1 }
  0xb7   :  { %v488_v42 = vpack.c.bf16 %v219_v40, %v217_v36  ;;  %v508_v43 = vpack.c.bf16 %v239_v41, %v237_v37 }
  0xb9   :  { %560 = vst [vmem:[%s736_s2 + $0x8] sm:$0xff] %v488_v42  }
  0xba   :  { %564 = vst [vmem:[%s736_s2 + $0x28] sm:$0xff] %v508_v43  }
  0xbd   :  { %v259_v44 = vpop.f32.mrf.mxu2  ;;  %v279_v45 = vpop.f32.mrf.mxu3 }
  0xbe   :  { %v528_v46 = vpack.c.bf16 %v259_v44, %v257_v38  ;;  %v548_v47 = vpack.c.bf16 %v279_v45, %v277_v39  ;;  %v222_v48 = vpop.f32.mrf.mxu0  ;;  %v242_v49 = vpop.f32.mrf.mxu1 }
  0xc0   :  { %568 = vst [vmem:[%s736_s2 + $0x48] sm:$0xff] %v528_v46  }
  0xc1   :  { %572 = vst [vmem:[%s736_s2 + $0x68] sm:$0xff] %v548_v47  }
  0xc5   :  { %v262_v50 = vpop.f32.mrf.mxu2  ;;  %v282_v51 = vpop.f32.mrf.mxu3 }
  0xc6   :  { %v224_v52 = vpop.f32.mrf.mxu0  ;;  %v244_v53 = vpop.f32.mrf.mxu1 }
  0xc7   :  { %v493_v54 = vpack.c.bf16 %v224_v52, %v222_v48  ;;  %v513_v55 = vpack.c.bf16 %v244_v53, %v242_v49 }
  0xc9   :  { %561 = vst [vmem:[%s736_s2 + $0x10] sm:$0xff] %v493_v54  }
  0xca   :  { %565 = vst [vmem:[%s736_s2 + $0x30] sm:$0xff] %v513_v55  }
  0xcd   :  { %v264_v56 = vpop.f32.mrf.mxu2  ;;  %v284_v57 = vpop.f32.mrf.mxu3 }
  0xce   :  { %v533_v58 = vpack.c.bf16 %v264_v56, %v262_v50  ;;  %v553_v59 = vpack.c.bf16 %v284_v57, %v282_v51  ;;  %v227_v60 = vpop.f32.mrf.mxu0  ;;  %v247_v61 = vpop.f32.mrf.mxu1 }
  0xd0   :  { %569 = vst [vmem:[%s736_s2 + $0x50] sm:$0xff] %v533_v58  }
  0xd1   :  { %573 = vst [vmem:[%s736_s2 + $0x70] sm:$0xff] %v553_v59  }
  0xd5   :  { %v267_v62 = vpop.f32.mrf.mxu2  ;;  %v287_v63 = vpop.f32.mrf.mxu3 }
  0xd6   :  { %v229_v0 = vpop.f32.mrf.mxu0  ;;  %v249_v1 = vpop.f32.mrf.mxu1 }
  0xd7   :  { %v498_v2 = vpack.c.bf16 %v229_v0, %v227_v60  ;;  %v518_v3 = vpack.c.bf16 %v249_v1, %v247_v61 }
  0xd9   :  { %562 = vst [vmem:[%s736_s2 + $0x18] sm:$0xff] %v498_v2  }
  0xda   :  { %566 = vst [vmem:[%s736_s2 + $0x38] sm:$0xff] %v518_v3  }
  0xdd   :  { %v269_v4 = vpop.f32.mrf.mxu2  ;;  %v289_v5 = vpop.f32.mrf.mxu3 }
  0xde   :  { %v538_v6 = vpack.c.bf16 %v269_v4, %v267_v62  ;;  %v558_v7 = vpack.c.bf16 %v289_v5, %v287_v63 }
  0xe0   :  { %570 = vst [vmem:[%s736_s2 + $0x58] sm:$0xff] %v538_v6  }
  0xe1   :  { %574 = vst [vmem:[%s736_s2 + $0x78] sm:$0xff] %v558_v7  }

</bundles_post_ra>
